<compile_context>
chip_gen: v5e
topology: v5e:2x2
jax: 0.10.0
libtpu: 0.0.40
codegen_flags: <defaults>
</compile_context>

<pallas_src>
import functools
import math

import jax
import jax.numpy as jnp
from jax.experimental import pallas as pl
from jax.experimental.pallas import tpu as pltpu

MAX_CLF_LENGTH = 40  # kept for parity with the PyTorch module

_SQRT1_2 = 1.0 / math.sqrt(2.0)


def _round_up(x, m):
    return ((x + m - 1) // m) * m


def _cdiv(a, b):
    return -(-a // b)


def _tpu_caps():
    """(physical VMEM bytes, batch-tile cap) for the local TPU generation."""
    vmem_cap = 64 << 20          # conservative default (v7x per-TensorCore)
    try:
        info = pltpu.get_tpu_info()
        vmem_cap = int(getattr(info, "vmem_capacity_bytes", vmem_cap))
    except Exception:
        pass
    if vmem_cap < (32 << 20):
        vmem_cap = 64 << 20
    kind = ""
    try:
        kind = jax.devices()[0].device_kind.lower()
    except Exception:
        pass
    # 256-row tiles fill the 256-wide MXU on v6e/v7x; v5e's MXU is 128-wide.
    tb_cap = 256 if ("v6" in kind or "v7" in kind) else 128
    return vmem_cap, tb_cap


# ----------------------------------------------------------------------------
# Fused Pallas kernel: surrogate encoder + logit_fc head
# ----------------------------------------------------------------------------
def _fused_kernel(x_ref, wa_ref, w1_ref, w2_ref, consts_ref, o_ref,
                  *, two_h, hp, h2p, outp):
    # Packed constants (8, CW):
    #   row 0: pooler bias   row 1: b1   row 2: gamma   row 3: beta
    #   row 4: b2            row 5: LayerNorm column mask (1 on real 2H cols)
    consts = consts_ref[...]
    bpool = consts[0:1, 0:hp]
    b1 = consts[1:2, 0:h2p]
    gamma = consts[2:3, 0:h2p]
    beta = consts[3:4, 0:h2p]
    b2 = consts[4:5, 0:outp]
    mask = consts[5:6, 0:h2p]

    # --- surrogate encoder (folded): pooled = [enc_in | semb] @ W_a + b -----
    pooled = jnp.dot(x_ref[...], wa_ref[...],
                     preferred_element_type=jnp.float32) + bpool    # (TB, Hp)
    x = jnp.tanh(pooled)

    # --- logit_fc: (Dropout=id) Linear -> GeLU -> LayerNorm -> Linear -------
    h = jnp.dot(x.astype(jnp.bfloat16), w1_ref[...],
                preferred_element_type=jnp.float32) + b1            # (TB, H2p)

    # Exact erf-GeLU.  Padded columns of h are exactly 0 by construction
    # (zero-padded weights / biases), so gelu(0) = 0 there.
    g = 0.5 * h * (1.0 + jax.lax.erf(h * jnp.float32(_SQRT1_2)))

    # BertLayerNorm(eps=1e-12) over the real 2H columns.  `mask` zeroes the
    # padded lanes of (g - mu); padded lanes of g are already 0 so the sums
    # over the full padded width are exact.
    inv_n = jnp.float32(1.0 / two_h)
    mu = jnp.sum(g, axis=-1, keepdims=True) * inv_n
    d = (g - mu) * mask
    var = jnp.sum(d * d, axis=-1, keepdims=True) * inv_n
    hn = d * jax.lax.rsqrt(var + jnp.float32(1e-12)) * gamma + beta

    logit = jnp.dot(hn.astype(jnp.bfloat16), w2_ref[...],
                    preferred_element_type=jnp.float32) + b2        # (TB, OUTp)
    o_ref[...] = logit.astype(o_ref.dtype)


# ----------------------------------------------------------------------------
# Model wrapper
# ----------------------------------------------------------------------------
class ClassifierModelPallas:
    """JAX/Pallas re-implementation of ClassifierModel (model_type='full')."""

    def __init__(self, num_answers, hid_dim=32, feat_dim=16, vocab=64,
                 key=jax.random.PRNGKey(0)):
        self.hid_dim = H = hid_dim
        self.feat_dim = F = feat_dim
        self.output_dim = 1 if num_answers == 2 else num_answers
        OD = self.output_dim

        self.k_real = F + 4 + H                       # [enc_in | semb] width
        self.kp = _round_up(self.k_real, 128)
        self.hp = _round_up(H, 128)
        self.h2p = _round_up(2 * H, 128)
        self.outp = _round_up(OD, 128)
        self.cw = max(self.hp, self.h2p, self.outp)

        self.vmem_cap, self.tb_cap = _tpu_caps()

        keys = jax.random.split(key, 6)
        init = lambda k, s: (0.02 * jax.random.normal(k, s)).astype(jnp.float32)

        # TODO(synk): the full LXRTEncoder (12-layer cross-modal transformer)
        # has no clean single-kernel Pallas equivalent; a deterministic
        # surrogate pooled encoder (visual/box projection + sentence-embedding
        # mean + tanh pooler) stands in for it.
        wenc = jnp.concatenate([init(keys[0], (F, H)),       # visual projection
                                init(keys[1], (4, H))], 0)   # box projection
        emb = init(keys[2], (vocab, H))
        wpool = init(keys[3], (H, H))
        w1 = init(keys[4], (H, 2 * H))
        w2 = init(keys[5], (2 * H, OD))
        # init_bert_weights: Linear biases 0, LayerNorm gamma 1 / beta 0.
        self._ref_params = dict(wenc=wenc, emb=emb, wpool=wpool, w1=w1, w2=w2)

        def pad2(a, rows, cols, dtype):
            out = jnp.zeros((rows, cols), dtype)
            return out.at[:a.shape[0], :a.shape[1]].set(a.astype(dtype))

        # Folded encoder weight: [enc_in|semb] @ W_a == (enc_in@Wenc + semb) @ Wpool.
        # The product is formed in f32 and cast to bf16 exactly once.
        wa = jnp.concatenate([wenc @ wpool, wpool], axis=0)          # (F+4+H, H)
        self.wa = pad2(wa, self.kp, self.hp, jnp.bfloat16)
        self.w1 = pad2(w1, self.hp, self.h2p, jnp.bfloat16)
        self.w2 = pad2(w2, self.h2p, self.outp, jnp.bfloat16)
        self.emb = emb.astype(jnp.bfloat16)                          # bf16 gather

        consts = jnp.zeros((8, self.cw), jnp.float32)
        consts = consts.at[2, :2 * H].set(1.0)                       # gamma
        consts = consts.at[5, :2 * H].set(1.0)                       # LN col mask
        self.consts = consts                                         # biases/beta 0

    # -- pure-JAX f32 reference (same surrogate encoder, exact logit_fc) -----
    def reference(self, feat, pos, sent_ids):
        p = self._ref_params
        semb = jnp.mean(jnp.take(p["emb"], sent_ids, axis=0), axis=1)
        enc_in = jnp.concatenate([jnp.mean(feat, 1), jnp.mean(pos, 1)], -1)
        v = enc_in @ p["wenc"] + semb
        x = jnp.tanh(v @ p["wpool"])
        h = x @ p["w1"]
        g = 0.5 * h * (1.0 + jax.lax.erf(h * _SQRT1_2))
        mu = jnp.mean(g, axis=-1, keepdims=True)
        var = jnp.mean((g - mu) ** 2, axis=-1, keepdims=True)
        hn = (g - mu) * jax.lax.rsqrt(var + 1e-12)
        return hn @ p["w2"]

    # -- fused Pallas forward -------------------------------------------------
    def _run(self, x_cat_p, TB, Bp, single_buffer_weights):
        Kp, Hp, H2p, OUTp, CW = self.kp, self.hp, self.h2p, self.outp, self.cw
        H = self.hid_dim

        def wspec(shape):
            # Weights have a constant index_map (resident across the grid);
            # one VMEM copy suffices -> frees VMEM on v7x (64 MiB / TC).
            if single_buffer_weights:
                return pl.BlockSpec(shape, lambda i: (0, 0),
                                    pipeline_mode=pl.Buffered(1))
            return pl.BlockSpec(shape, lambda i: (0, 0))

        weight_bytes = (Kp * Hp + Hp * H2p + H2p * OUTp) * 2 + 8 * CW * 4
        act_bytes = TB * Kp * 2 + TB * OUTp * 4          # per activation buffer
        headroom = (4 << 20) + 6 * TB * H2p * 4          # f32 intermediates etc.
        wbuf = 1 if single_buffer_weights else 2
        vmem_req = wbuf * weight_bytes + 2 * act_bytes + headroom
        vmem_limit = int(min(max(vmem_req, 16 << 20),
                             self.vmem_cap - (16 << 20)))

        flops = 2 * Bp * (Kp * Hp + Hp * H2p + H2p * OUTp)
        transcendentals = Bp * (Hp + H2p)                # tanh + erf
        bytes_accessed = int(Bp * Kp * 2 + Bp * OUTp * 4 + weight_bytes)

        kernel = functools.partial(_fused_kernel, two_h=2 * H,
                                   hp=Hp, h2p=H2p, outp=OUTp)

        return pl.pallas_call(
            kernel,
            out_shape=jax.ShapeDtypeStruct((Bp, OUTp), jnp.float32),
            grid_spec=pltpu.PrefetchScalarGridSpec(
                num_scalar_prefetch=0,
                grid=(Bp // TB,),
                in_specs=[
                    pl.BlockSpec((TB, Kp), lambda i: (i, 0)),   # [enc|semb] bf16
                    wspec((Kp, Hp)),                            # folded W_a
                    wspec((Hp, H2p)),                           # w1
                    wspec((H2p, OUTp)),                         # w2
                    wspec((8, CW)),                             # packed consts
                ],
                out_specs=pl.BlockSpec((TB, OUTp), lambda i: (i, 0)),
            ),
            compiler_params=pltpu.CompilerParams(
                dimension_semantics=("parallel",),
                vmem_limit_bytes=vmem_limit,
            ),
            cost_estimate=pl.CostEstimate(
                flops=flops, transcendentals=transcendentals,
                bytes_accessed=bytes_accessed),
        )(x_cat_p, self.wa, self.w1, self.w2, self.consts)

    def __call__(self, feat, pos, sent_ids):
        """
        feat: (B, O, F) float32, pos: (B, O, 4) float32,
        sent_ids: (B, L) int32 token ids (stand-in for the list of strings).
        returns: (B, output_dim) logits (float32).
        """
        B = feat.shape[0]

        # XLA-side glue: token-embedding gather (bf16 table) + mean pooling.
        semb = jnp.mean(jnp.take(self.emb, sent_ids, axis=0), axis=1,
                        dtype=jnp.float32)                           # (B, H)
        enc_in = jnp.concatenate([jnp.mean(feat, axis=1),
                                  jnp.mean(pos, axis=1)], axis=-1)   # (B, F+4)
        x_cat = jnp.concatenate([enc_in, semb], axis=-1).astype(jnp.bfloat16)

        # Batch tiling: at least 2 grid steps so ("parallel",) can shard over
        # both v7x TensorCores; TB cap is generation-dependent (128 v5e / 256 v6e+).
        TB = min(self.tb_cap, _round_up(max(1, _cdiv(B, 2)), 8))
        steps = max(2, _cdiv(B, TB))
        Bp = steps * TB

        # Single pad (batch rows + lane cols) on the bf16 input; padded lanes
        # hit zero rows of W_a so results on real columns are exact.
        x_cat_p = jnp.pad(x_cat, ((0, Bp - B), (0, self.kp - self.k_real)))

        try:
            out = self._run(x_cat_p, TB, Bp, single_buffer_weights=True)
        except Exception:
            # Fallback if this JAX build rejects pipeline_mode=pl.Buffered(1).
            out = self._run(x_cat_p, TB, Bp, single_buffer_weights=False)

        return out[:B, :self.output_dim]


# ----------------------------------------------------------------------------
if __name__ == "__main__":
    B, O, F, L = 2, 4, 16, 8
    num_answers = 8

    key = jax.random.PRNGKey(0)
    k_feat, k_pos, k_sent, k_params = jax.random.split(key, 4)

    feat = jax.random.normal(k_feat, (B, O, F), dtype=jnp.float32)
    pos = jax.random.uniform(k_pos, (B, O, 4), dtype=jnp.float32)
    sent_ids = jax.random.randint(k_sent, (B, L), 0, 64, dtype=jnp.int32)

    model = ClassifierModelPallas(num_answers, hid_dim=32, feat_dim=F,
                                  vocab=64, key=k_params)

    logits = model(feat, pos, sent_ids)
    jax.block_until_ready(logits)

    assert logits.shape == (B, num_answers)
    assert bool(jnp.all(jnp.isfinite(logits)))

    # Tolerance check vs. the pure-JAX f32 reference (bf16 MXU inputs give
    # ~1e-3 expected absolute error at these magnitudes).
    ref = model.reference(feat, pos, sent_ids)
    max_err = float(jnp.max(jnp.abs(logits - ref)))
    assert max_err < 5e-2, f"max abs error vs f32 reference: {max_err}"

    print("KERNEL_OK")
</pallas_src>

<mosaic_0001>
module attributes {stable_mosaic.version = 11 : i64} {
  func.func @_fused_kernel(%arg0: i32, %arg1: memref<8x128xbf16, #tpu.memory_space<vmem>>, %arg2: memref<128x128xbf16, #tpu.memory_space<vmem>>, %arg3: memref<128x128xbf16, #tpu.memory_space<vmem>>, %arg4: memref<128x128xbf16, #tpu.memory_space<vmem>>, %arg5: memref<8x128xf32, #tpu.memory_space<vmem>>, %arg6: memref<8x128xf32, #tpu.memory_space<vmem>>) attributes {dimension_semantics = [#tpu.dimension_semantics<parallel>], iteration_bounds = array<i64: 2>, scalar_prefetch = 0 : i64, scratch_operands = 0 : i64, tpu.core_type = #tpu.core_type<tc>, window_params = [{transform_indices = @transform_0, window_bounds = array<i64: 8, 128>}, {pipeline_mode = #tpu.pipeline_mode<synchronous>, transform_indices = @transform_1, window_bounds = array<i64: 128, 128>}, {pipeline_mode = #tpu.pipeline_mode<synchronous>, transform_indices = @transform_2, window_bounds = array<i64: 128, 128>}, {pipeline_mode = #tpu.pipeline_mode<synchronous>, transform_indices = @transform_3, window_bounds = array<i64: 128, 128>}, {pipeline_mode = #tpu.pipeline_mode<synchronous>, transform_indices = @transform_4, window_bounds = array<i64: 8, 128>}, {transform_indices = @transform_5, window_bounds = array<i64: 8, 128>}]} {
    %c0 = arith.constant 0 : index
    %c0_0 = arith.constant 0 : index
    %0 = vector.load %arg5[%c0, %c0_0] : memref<8x128xf32, #tpu.memory_space<vmem>>, vector<8x128xf32>
    %1 = vector.extract_strided_slice %0 {offsets = [0, 0], sizes = [1, 128], strides = [1, 1]} : vector<8x128xf32> to vector<1x128xf32>
    %2 = vector.extract_strided_slice %0 {offsets = [1, 0], sizes = [1, 128], strides = [1, 1]} : vector<8x128xf32> to vector<1x128xf32>
    %3 = vector.extract_strided_slice %0 {offsets = [2, 0], sizes = [1, 128], strides = [1, 1]} : vector<8x128xf32> to vector<1x128xf32>
    %4 = vector.extract_strided_slice %0 {offsets = [3, 0], sizes = [1, 128], strides = [1, 1]} : vector<8x128xf32> to vector<1x128xf32>
    %5 = vector.extract_strided_slice %0 {offsets = [4, 0], sizes = [1, 128], strides = [1, 1]} : vector<8x128xf32> to vector<1x128xf32>
    %6 = vector.extract_strided_slice %0 {offsets = [5, 0], sizes = [1, 128], strides = [1, 1]} : vector<8x128xf32> to vector<1x128xf32>
    %c0_1 = arith.constant 0 : index
    %c0_2 = arith.constant 0 : index
    %7 = vector.load %arg1[%c0_1, %c0_2] : memref<8x128xbf16, #tpu.memory_space<vmem>>, vector<8x128xbf16>
    %c0_3 = arith.constant 0 : index
    %c0_4 = arith.constant 0 : index
    %8 = vector.load %arg2[%c0_3, %c0_4] : memref<128x128xbf16, #tpu.memory_space<vmem>>, vector<128x128xbf16>
    %cst = arith.constant dense<0.000000e+00> : vector<8x128xf32>
    %9 = tpu.matmul %7, %8, %cst {dimension_numbers = #tpu.dot_dimension_numbers<[1], [0], [0], [1], [0, 0, 1, 1], [], []>} : vector<8x128xbf16>, vector<128x128xbf16>, vector<8x128xf32> -> vector<8x128xf32>
    %10 = vector.broadcast %1 : vector<1x128xf32> to vector<8x128xf32>
    %11 = arith.addf %9, %10 : vector<8x128xf32>
    %12 = math.tanh %11 : vector<8x128xf32>
    %13 = arith.truncf %12 : vector<8x128xf32> to vector<8x128xbf16>
    %c0_5 = arith.constant 0 : index
    %c0_6 = arith.constant 0 : index
    %14 = vector.load %arg3[%c0_5, %c0_6] : memref<128x128xbf16, #tpu.memory_space<vmem>>, vector<128x128xbf16>
    %cst_7 = arith.constant dense<0.000000e+00> : vector<8x128xf32>
    %15 = tpu.matmul %13, %14, %cst_7 {dimension_numbers = #tpu.dot_dimension_numbers<[1], [0], [0], [1], [0, 0, 1, 1], [], []>} : vector<8x128xbf16>, vector<128x128xbf16>, vector<8x128xf32> -> vector<8x128xf32>
    %16 = vector.broadcast %2 : vector<1x128xf32> to vector<8x128xf32>
    %17 = arith.addf %15, %16 : vector<8x128xf32>
    %cst_8 = arith.constant 5.000000e-01 : f32
    %18 = vector.broadcast %cst_8 : f32 to vector<8x128xf32>
    %19 = arith.mulf %18, %17 : vector<8x128xf32>
    %cst_9 = arith.constant 0.707106769 : f32
    %20 = vector.broadcast %cst_9 : f32 to vector<8x128xf32>
    %21 = arith.mulf %17, %20 : vector<8x128xf32>
    %22 = math.erf %21 : vector<8x128xf32>
    %cst_10 = arith.constant 1.000000e+00 : f32
    %23 = vector.broadcast %cst_10 : f32 to vector<8x128xf32>
    %24 = arith.addf %23, %22 : vector<8x128xf32>
    %25 = arith.mulf %19, %24 : vector<8x128xf32>
    %cst_11 = arith.constant dense<0.000000e+00> : vector<8xf32>
    %26 = vector.multi_reduction <add>, %25, %cst_11 [1] : vector<8x128xf32> to vector<8xf32>
    %27 = vector.shape_cast %26 : vector<8xf32> to vector<8x1xf32>
    %cst_12 = arith.constant 1.562500e-02 : f32
    %28 = vector.broadcast %cst_12 : f32 to vector<8x1xf32>
    %29 = arith.mulf %27, %28 : vector<8x1xf32>
    %30 = vector.broadcast %29 : vector<8x1xf32> to vector<8x128xf32>
    %31 = arith.subf %25, %30 : vector<8x128xf32>
    %32 = vector.broadcast %6 : vector<1x128xf32> to vector<8x128xf32>
    %33 = arith.mulf %31, %32 : vector<8x128xf32>
    %34 = arith.mulf %33, %33 : vector<8x128xf32>
    %cst_13 = arith.constant dense<0.000000e+00> : vector<8xf32>
    %35 = vector.multi_reduction <add>, %34, %cst_13 [1] : vector<8x128xf32> to vector<8xf32>
    %36 = vector.shape_cast %35 : vector<8xf32> to vector<8x1xf32>
    %cst_14 = arith.constant 1.562500e-02 : f32
    %37 = vector.broadcast %cst_14 : f32 to vector<8x1xf32>
    %38 = arith.mulf %36, %37 : vector<8x1xf32>
    %cst_15 = arith.constant 9.99999996E-13 : f32
    %39 = vector.broadcast %cst_15 : f32 to vector<8x1xf32>
    %40 = arith.addf %38, %39 : vector<8x1xf32>
    %41 = math.rsqrt %40 : vector<8x1xf32>
    %42 = vector.broadcast %41 : vector<8x1xf32> to vector<8x128xf32>
    %43 = arith.mulf %33, %42 : vector<8x128xf32>
    %44 = vector.broadcast %3 : vector<1x128xf32> to vector<8x128xf32>
    %45 = arith.mulf %43, %44 : vector<8x128xf32>
    %46 = vector.broadcast %4 : vector<1x128xf32> to vector<8x128xf32>
    %47 = arith.addf %45, %46 : vector<8x128xf32>
    %48 = arith.truncf %47 : vector<8x128xf32> to vector<8x128xbf16>
    %c0_16 = arith.constant 0 : index
    %c0_17 = arith.constant 0 : index
    %49 = vector.load %arg4[%c0_16, %c0_17] : memref<128x128xbf16, #tpu.memory_space<vmem>>, vector<128x128xbf16>
    %cst_18 = arith.constant dense<0.000000e+00> : vector<8x128xf32>
    %50 = tpu.matmul %48, %49, %cst_18 {dimension_numbers = #tpu.dot_dimension_numbers<[1], [0], [0], [1], [0, 0, 1, 1], [], []>} : vector<8x128xbf16>, vector<128x128xbf16>, vector<8x128xf32> -> vector<8x128xf32>
    %51 = vector.broadcast %5 : vector<1x128xf32> to vector<8x128xf32>
    %52 = arith.addf %50, %51 : vector<8x128xf32>
    %c0_19 = arith.constant 0 : index
    %c0_20 = arith.constant 0 : index
    %53 = vector.load %arg6[%c0_19, %c0_20] : memref<8x128xf32, #tpu.memory_space<vmem>>, vector<8x128xf32>
    tpu.vector_store %arg6[%c0_19, %c0_20], %52 {strides = array<i32>} : memref<8x128xf32, #tpu.memory_space<vmem>>, vector<8x128xf32>,
    return
  }
  func.func @transform_0(%arg0: i32) -> (i32, i32) {
    %c0_i32 = arith.constant 0 : i32
    %c0_i32_0 = arith.constant 0 : i32
    return %arg0, %c0_i32 : i32, i32
  }
  func.func @transform_1(%arg0: i32) -> (i32, i32) {
    %c0_i32 = arith.constant 0 : i32
    %c0_i32_0 = arith.constant 0 : i32
    %c0_i32_1 = arith.constant 0 : i32
    return %c0_i32, %c0_i32_0 : i32, i32
  }
  func.func @transform_2(%arg0: i32) -> (i32, i32) {
    %c0_i32 = arith.constant 0 : i32
    %c0_i32_0 = arith.constant 0 : i32
    %c0_i32_1 = arith.constant 0 : i32
    return %c0_i32, %c0_i32_0 : i32, i32
  }
  func.func @transform_3(%arg0: i32) -> (i32, i32) {
    %c0_i32 = arith.constant 0 : i32
    %c0_i32_0 = arith.constant 0 : i32
    %c0_i32_1 = arith.constant 0 : i32
    return %c0_i32, %c0_i32_0 : i32, i32
  }
  func.func @transform_4(%arg0: i32) -> (i32, i32) {
    %c0_i32 = arith.constant 0 : i32
    %c0_i32_0 = arith.constant 0 : i32
    %c0_i32_1 = arith.constant 0 : i32
    return %c0_i32, %c0_i32_0 : i32, i32
  }
  func.func @transform_5(%arg0: i32) -> (i32, i32) {
    %c0_i32 = arith.constant 0 : i32
    %c0_i32_0 = arith.constant 0 : i32
    return %arg0, %c0_i32 : i32, i32
  }
}

module attributes {stable_mosaic.version = 11 : i64} {
  func.func @_fused_kernel(%arg0: i32, %arg1: memref<8x128xbf16, #tpu.memory_space<vmem>>, %arg2: memref<128x128xbf16, #tpu.memory_space<vmem>>, %arg3: memref<128x128xbf16, #tpu.memory_space<vmem>>, %arg4: memref<128x128xbf16, #tpu.memory_space<vmem>>, %arg5: memref<8x128xf32, #tpu.memory_space<vmem>>, %arg6: memref<8x128xf32, #tpu.memory_space<vmem>>) attributes {dimension_semantics = [#tpu.dimension_semantics<parallel>], iteration_bounds = array<i64: 2>, scalar_prefetch = 0 : i64, scratch_operands = 0 : i64, tpu.core_type = #tpu.core_type<tc>, window_params = [{transform_indices = @transform_0, window_bounds = array<i64: 8, 128>}, {pipeline_mode = #tpu.pipeline_mode<synchronous>, transform_indices = @transform_1, window_bounds = array<i64: 128, 128>}, {pipeline_mode = #tpu.pipeline_mode<synchronous>, transform_indices = @transform_2, window_bounds = array<i64: 128, 128>}, {pipeline_mode = #tpu.pipeline_mode<synchronous>, transform_indices = @transform_3, window_bounds = array<i64: 128, 128>}, {pipeline_mode = #tpu.pipeline_mode<synchronous>, transform_indices = @transform_4, window_bounds = array<i64: 8, 128>}, {transform_indices = @transform_5, window_bounds = array<i64: 8, 128>}]} {
    %c0 = arith.constant 0 : index
    %c0_0 = arith.constant 0 : index
    %0 = vector.load %arg5[%c0, %c0_0] : memref<8x128xf32, #tpu.memory_space<vmem>>, vector<8x128xf32>
    %1 = vector.extract_strided_slice %0 {offsets = [0, 0], sizes = [1, 128], strides = [1, 1]} : vector<8x128xf32> to vector<1x128xf32>
    %2 = vector.extract_strided_slice %0 {offsets = [1, 0], sizes = [1, 128], strides = [1, 1]} : vector<8x128xf32> to vector<1x128xf32>
    %3 = vector.extract_strided_slice %0 {offsets = [2, 0], sizes = [1, 128], strides = [1, 1]} : vector<8x128xf32> to vector<1x128xf32>
    %4 = vector.extract_strided_slice %0 {offsets = [3, 0], sizes = [1, 128], strides = [1, 1]} : vector<8x128xf32> to vector<1x128xf32>
    %5 = vector.extract_strided_slice %0 {offsets = [4, 0], sizes = [1, 128], strides = [1, 1]} : vector<8x128xf32> to vector<1x128xf32>
    %6 = vector.extract_strided_slice %0 {offsets = [5, 0], sizes = [1, 128], strides = [1, 1]} : vector<8x128xf32> to vector<1x128xf32>
    %c0_1 = arith.constant 0 : index
    %c0_2 = arith.constant 0 : index
    %7 = vector.load %arg1[%c0_1, %c0_2] : memref<8x128xbf16, #tpu.memory_space<vmem>>, vector<8x128xbf16>
    %c0_3 = arith.constant 0 : index
    %c0_4 = arith.constant 0 : index
    %8 = vector.load %arg2[%c0_3, %c0_4] : memref<128x128xbf16, #tpu.memory_space<vmem>>, vector<128x128xbf16>
    %cst = arith.constant dense<0.000000e+00> : vector<8x128xf32>
    %9 = tpu.matmul %7, %8, %cst {dimension_numbers = #tpu.dot_dimension_numbers<[1], [0], [0], [1], [0, 0, 1, 1], [], []>} : vector<8x128xbf16>, vector<128x128xbf16>, vector<8x128xf32> -> vector<8x128xf32>
    %10 = vector.broadcast %1 : vector<1x128xf32> to vector<8x128xf32>
    %11 = arith.addf %9, %10 : vector<8x128xf32>
    %12 = math.tanh %11 : vector<8x128xf32>
    %13 = arith.truncf %12 : vector<8x128xf32> to vector<8x128xbf16>
    %c0_5 = arith.constant 0 : index
    %c0_6 = arith.constant 0 : index
    %14 = vector.load %arg3[%c0_5, %c0_6] : memref<128x128xbf16, #tpu.memory_space<vmem>>, vector<128x128xbf16>
    %cst_7 = arith.constant dense<0.000000e+00> : vector<8x128xf32>
    %15 = tpu.matmul %13, %14, %cst_7 {dimension_numbers = #tpu.dot_dimension_numbers<[1], [0], [0], [1], [0, 0, 1, 1], [], []>} : vector<8x128xbf16>, vector<128x128xbf16>, vector<8x128xf32> -> vector<8x128xf32>
    %16 = vector.broadcast %2 : vector<1x128xf32> to vector<8x128xf32>
    %17 = arith.addf %15, %16 : vector<8x128xf32>
    %cst_8 = arith.constant 5.000000e-01 : f32
    %18 = vector.broadcast %cst_8 : f32 to vector<8x128xf32>
    %19 = arith.mulf %18, %17 : vector<8x128xf32>
    %cst_9 = arith.constant 0.707106769 : f32
    %20 = vector.broadcast %cst_9 : f32 to vector<8x128xf32>
    %21 = arith.mulf %17, %20 : vector<8x128xf32>
    %22 = math.erf %21 : vector<8x128xf32>
    %cst_10 = arith.constant 1.000000e+00 : f32
    %23 = vector.broadcast %cst_10 : f32 to vector<8x128xf32>
    %24 = arith.addf %23, %22 : vector<8x128xf32>
    %25 = arith.mulf %19, %24 : vector<8x128xf32>
    %cst_11 = arith.constant dense<0.000000e+00> : vector<8xf32>
    %26 = vector.multi_reduction <add>, %25, %cst_11 [1] : vector<8x128xf32> to vector<8xf32>
    %27 = vector.shape_cast %26 : vector<8xf32> to vector<8x1xf32>
    %cst_12 = arith.constant 1.562500e-02 : f32
    %28 = vector.broadcast %cst_12 : f32 to vector<8x1xf32>
    %29 = arith.mulf %27, %28 : vector<8x1xf32>
    %30 = vector.broadcast %29 : vector<8x1xf32> to vector<8x128xf32>
    %31 = arith.subf %25, %30 : vector<8x128xf32>
    %32 = vector.broadcast %6 : vector<1x128xf32> to vector<8x128xf32>
    %33 = arith.mulf %31, %32 : vector<8x128xf32>
    %34 = arith.mulf %33, %33 : vector<8x128xf32>
    %cst_13 = arith.constant dense<0.000000e+00> : vector<8xf32>
    %35 = vector.multi_reduction <add>, %34, %cst_13 [1] : vector<8x128xf32> to vector<8xf32>
    %36 = vector.shape_cast %35 : vector<8xf32> to vector<8x1xf32>
    %cst_14 = arith.constant 1.562500e-02 : f32
    %37 = vector.broadcast %cst_14 : f32 to vector<8x1xf32>
    %38 = arith.mulf %36, %37 : vector<8x1xf32>
    %cst_15 = arith.constant 9.99999996E-13 : f32
    %39 = vector.broadcast %cst_15 : f32 to vector<8x1xf32>
    %40 = arith.addf %38, %39 : vector<8x1xf32>
    %41 = math.rsqrt %40 : vector<8x1xf32>
    %42 = vector.broadcast %41 : vector<8x1xf32> to vector<8x128xf32>
    %43 = arith.mulf %33, %42 : vector<8x128xf32>
    %44 = vector.broadcast %3 : vector<1x128xf32> to vector<8x128xf32>
    %45 = arith.mulf %43, %44 : vector<8x128xf32>
    %46 = vector.broadcast %4 : vector<1x128xf32> to vector<8x128xf32>
    %47 = arith.addf %45, %46 : vector<8x128xf32>
    %48 = arith.truncf %47 : vector<8x128xf32> to vector<8x128xbf16>
    %c0_16 = arith.constant 0 : index
    %c0_17 = arith.constant 0 : index
    %49 = vector.load %arg4[%c0_16, %c0_17] : memref<128x128xbf16, #tpu.memory_space<vmem>>, vector<128x128xbf16>
    %cst_18 = arith.constant dense<0.000000e+00> : vector<8x128xf32>
    %50 = tpu.matmul %48, %49, %cst_18 {dimension_numbers = #tpu.dot_dimension_numbers<[1], [0], [0], [1], [0, 0, 1, 1], [], []>} : vector<8x128xbf16>, vector<128x128xbf16>, vector<8x128xf32> -> vector<8x128xf32>
    %51 = vector.broadcast %5 : vector<1x128xf32> to vector<8x128xf32>
    %52 = arith.addf %50, %51 : vector<8x128xf32>
    %c0_19 = arith.constant 0 : index
    %c0_20 = arith.constant 0 : index
    %53 = vector.load %arg6[%c0_19, %c0_20] : memref<8x128xf32, #tpu.memory_space<vmem>>, vector<8x128xf32>
    tpu.vector_store %arg6[%c0_19, %c0_20], %52 {strides = array<i32>} : memref<8x128xf32, #tpu.memory_space<vmem>>, vector<8x128xf32>,
    return
  }
  func.func @transform_0(%arg0: i32) -> (i32, i32) {
    %c0_i32 = arith.constant 0 : i32
    %c0_i32_0 = arith.constant 0 : i32
    return %arg0, %c0_i32 : i32, i32
  }
  func.func @transform_1(%arg0: i32) -> (i32, i32) {
    %c0_i32 = arith.constant 0 : i32
    %c0_i32_0 = arith.constant 0 : i32
    %c0_i32_1 = arith.constant 0 : i32
    return %c0_i32, %c0_i32_0 : i32, i32
  }
  func.func @transform_2(%arg0: i32) -> (i32, i32) {
    %c0_i32 = arith.constant 0 : i32
    %c0_i32_0 = arith.constant 0 : i32
    %c0_i32_1 = arith.constant 0 : i32
    return %c0_i32, %c0_i32_0 : i32, i32
  }
  func.func @transform_3(%arg0: i32) -> (i32, i32) {
    %c0_i32 = arith.constant 0 : i32
    %c0_i32_0 = arith.constant 0 : i32
    %c0_i32_1 = arith.constant 0 : i32
    return %c0_i32, %c0_i32_0 : i32, i32
  }
  func.func @transform_4(%arg0: i32) -> (i32, i32) {
    %c0_i32 = arith.constant 0 : i32
    %c0_i32_0 = arith.constant 0 : i32
    %c0_i32_1 = arith.constant 0 : i32
    return %c0_i32, %c0_i32_0 : i32, i32
  }
  func.func @transform_5(%arg0: i32) -> (i32, i32) {
    %c0_i32 = arith.constant 0 : i32
    %c0_i32_0 = arith.constant 0 : i32
    return %arg0, %c0_i32 : i32, i32
  }
}

</mosaic_0001>

<bundles_post_ra>
// kernel: tpu_custom_call.1
= control target key start
LH: loop header
LB: loop body
LE: loop exit
PB: predicated region body
PF: predicated region fallthrough
CT: control target
= control target key end

     0   :  { %10 = vsyncpa [#allocation3], 0  ;;  %s1417_s0 = inlined_call_operand.hbm [shape: bf16[16,128], index: 0, kind: input, shape index: {}]   ;;  %s1418_s1 = inlined_call_operand.hbm [shape: bf16[128,128], index: 1, kind: input, shape index: {}]   ;;  %s1419_s2 = inlined_call_operand.hbm [shape: bf16[128,128], index: 2, kind: input, shape index: {}]   ;;  %s1420_s3 = inlined_call_operand.hbm [shape: bf16[128,128], index: 3, kind: input, shape index: {}]   ;;  %s1421_s4 = inlined_call_operand.hbm [shape: f32[8,128], index: 4, kind: input, shape index: {}]   ;;  %s1422_s5 = inlined_call_operand.hbm [shape: f32[16,128], index: 5, kind: output, shape index: {}]  }
   0x1   :  { %12 = vsyncpa [#allocation3 + $0x1], 0 }
   0x2   :  { %13 = vsyncpa [#allocation6], 0 }
   0x3   :  { %14 = vsyncpa [#allocation9], 0 }
   0x4   :  { %15 = vsyncpa [#allocation4], 0 }
   0x5   :  { %17 = vsyncpa [#allocation4 + $0x1], 0  ;;  %s1238_s18 = smov 0   ;;  %s1240_s19 = smov 0  }
   0x6   :  { %s1242_s20 = smov 0   ;;  %s1244_s21 = smov 0  }
   0x7 LB: > { %s175_s24 = sshll.u32 %s1418_s1, 4  ;;  %s1262_s25 = sadd.s32 4294967295, %s1200_s21   ;;  %s1200_s21 = sphi %s1244_s21, %s1434_s21   ;;  %s1196_s20 = sphi %s1242_s20, %s1433_s20   ;;  %s1192_s19 = sphi %s1240_s19, %s1432_s19   ;;  %s1188_s18 = sphi %s1238_s18, %s1431_s18   ;;  %s176_s24 = int_to_ptr.hbm [resolvable:$true] %s175_s24 }
   0x8   : > { %p741_p0 = scmp.ge.s32.totalorder %s1200_s21, 1  ;;  %p44_p1 = scmp.eq.s32.totalorder %s1262_s25, 0 }
   0x9   : > { %p164_p2 = scmp.lt.s32.totalorder %s1200_s21, 3  ;;  %s1202_s27 = smov [#allocation5]  }
   0xa   : > { %s177_s28 = sshll.u32 %s1202_s27, 4  ;;  %s203_s6 = sshll.u32 %s1420_s3, 4  ;;  %s178_s28 = int_to_ptr.vmem [resolvable:$true] %s177_s28  ;;  %s204_s6 = int_to_ptr.hbm [resolvable:$true] %s203_s6 }
   0xb   : > { %p1267_p3 = pnand %p741_p0, %p164_p2  ;;  %s189_s10 = sshll.u32 %s1419_s2, 4  ;;  %s190_s10 = int_to_ptr.hbm [resolvable:$true] %s189_s10 }
   0xc   : > { %s1203_s11 = smov [#allocation8]   ;;  %s1204_s13 = smov 64  }
   0xd   : > { %p901_p4 = pneg %p1267_p3  ;;  %s205_s12 = sshll.u32 %s1203_s11, 4  ;;  %s206_s12 = int_to_ptr.vmem [resolvable:$true] %s205_s12 }
   0xe   : > { %s1205_s14 = smov 4   ;;  %s218_s17 = sshll.u32 %s1421_s4, 4  ;;  %s219_s17 = int_to_ptr.hbm [resolvable:$true] %s218_s17 }
   0xf   : > { %p1279_p6 = pnand %p901_p4, %p44_p1  ;;  %s1206_s22 = smov [#allocation7]  }
  0x10   : > { %s191_s23 = sshll.u32 %s1206_s22, 4  ;;  %s1299_s29 = sadd.s32 1, %s1200_s21   ;;  %s192_s23 = int_to_ptr.vmem [resolvable:$true] %s191_s23 }
  0x11   : > { %904 = dma.hbm_to_vmem [thread:$0]  (!%p1279_p6), %s176_s24, 1024, %s178_s28, [#allocation6], %s1204_s13, %s1204_s13, %s1205_s14  }
  0x12   : > { %910 = dma.hbm_to_vmem [thread:$0]  (!%p1279_p6), %s204_s6, 1024, %s206_s12, [#allocation9], %s1204_s13, %s1204_s13, %s1205_s14  }
  0x13   : > { %907 = dma.hbm_to_vmem [thread:$0]  (!%p1279_p6), %s190_s10, 1024, %s192_s23, [#allocation6], %s1204_s13, %s1204_s13, %s1205_s14  }
  0x14   : > { %s1207_s24 = smov [#allocation10]   ;;  %s740_s28 = sadd.s32 4294967294, %s1200_s21  }
  0x15   : > { %s220_s27 = sshll.u32 %s1207_s24, 4  ;;  %s27_s30 = ssub.s32 %s1200_s21, %s1299_s29  ;;  %s221_s27 = int_to_ptr.vmem [resolvable:$true] %s220_s27 }
  0x16   : > { %913 = dma.hbm_to_vmem [thread:$0]  (!%p1279_p6), %s219_s17, 128, %s221_s27, [#allocation9]  }
  0x17   : > { %s30_s6 = sadd.s32 1, %s1196_s20  ;;  %p28_p7 = scmp.eq.s32.totalorder %s27_s30, 0 }
  0x18   : > { %p37_p8 = scmp.ne.s32.totalorder %s1196_s20, %s1192_s19  ;;  %p38_p9 = scmp.eq.s32.totalorder %s1200_s21, 0 }
  0x19   : > { %p43_p10 = scmp.ne.s32.totalorder %s1192_s19, %s1188_s18  ;;  %p151_p13 = scmp.eq.s32.totalorder %s1262_s25, 1 }
  0x1a   : > { %s1310_s8 = scalar_select %p28_p7, %s1196_s20, %s30_s6  }
  0x1b   : > { %p1312_p11 = por %p38_p9, %p37_p8  ;;  %p1318_p12 = por %p44_p1, %p43_p10 }
  0x1c   : > { %p157_p0 = scmp.eq.s32.totalorder %s740_s28, 1  ;;  %p926_p2 = scmp.lt.s32.totalorder %s1200_s21, 2 }
  0x1d   : > { %s231_s10 = sand.u32 1, %s1196_s20   ;;  %p1325_p4 = por %p151_p13, %p37_p8 }
  0x1e   : > { %p1329_p6 = por %p157_p0, %p43_p10  ;;  %s747_s13 = sshll.u32 %s231_s10, 2 }
  0x1f   : > { %s748_s14 = sshll.u32 %s1200_s21, 2  ;;  %s235_s22 = scalar_lea.vmem [#allocation2], %s747_s13 }
  0x20   : > { %s239_s17 = scalar_lea.hbm %s1417_s0, %s748_s14  ;;  %s243_s23 = sshll.u32 %s235_s22, 4  ;;  %s244_s23 = int_to_ptr.vmem [resolvable:$true] %s243_s23 }
  0x21   : > { %s241_s24 = sshll.u32 %s239_s17, 4  ;;  %p1339_p7 = pnand %p926_p2, %p1312_p11  ;;  %s242_s24 = int_to_ptr.hbm [resolvable:$true] %s241_s24 }
  0x22   : > { %s232_s28 = scalar_lea.sflag [#allocation3], %s231_s10  ;;  %s1096_s30 = sshra.s32 %s242_s24, 4  ;;  %s1097_s30 = int_to_ptr.hbm [resolvable:$true] %s1096_s30 }
  0x23   : > { %s1098_s6 = scalar_lea.hbm %s1097_s30, 4  ;;  %p1100_p9 = pneg %p1339_p7 }
  0x24   : > { %p1099_p8 = scmp.ne.s32.totalorder %s1097_s30, %s1098_s6  ;;  %s1103_s15 = scalar_lea.hbm %s1417_s0, 8 }
  0x25   : > { %p1104_p11 = scmp.lt.s32.totalorder %s1097_s30, %s1417_s0  ;;  %p1105_p0 = scmp.lt.s32.totalorder %s1103_s15, %s1098_s6 }
  0x26   : > { %p1101_p10 = pnand %p1100_p9, %p1099_p8 }
  0x27   : > { %p1106_p2 = por %p1105_p0, %p1104_p11 }
  0x28   : > { %p1102_p13 = pneg %p1101_p10 }
  0x2a   : > { %p1107_p5 = pnand %p1106_p2, %p1102_p13 }
  0x2c   : > { %1110 = shalt.err (!%p1107_p5)
}
  0x2d   : > { %917 = dma.hbm_to_vmem [thread:$0]  (!%p1339_p7), %s242_s24, 64, %s244_s23, %s232_s28  }
  0x2e   : > { %252 = sbr.rel (%p1267_p3) target bundleno = 814 (0x32e), region = 40  ;;  %s1356_s10 = sand.u32 (!%p1267_p3), 1, %s1192_s19  }
  0x2f   : > { %s750_s17 = sshll.u32 (!%p1267_p3), %s1356_s10, 2  ;;  %s255_s22 = scalar_lea.sflag (!%p1267_p3), [#allocation3], %s1356_s10 }
  0x30   : > { %s1360_s13 = scalar_lea.vmem (!%p1267_p3), [#allocation2], %s750_s17 }
  0x33   : > { %1171 = dma.done.wait (%p1318_p12), %s255_s22, 64  }
  0x34   : > { %1173 = vsyncadd (%p1318_p12), %s255_s22, 4294967232 }
  0x35   : > { %1175 = dma.done.wait (%p44_p1), [#allocation6], 2048  }
  0x36   : > { %1177 = vsyncadd (%p44_p1), [#allocation6], 4294965248 }
  0x37   : > { %1179 = dma.done.wait (%p44_p1), [#allocation9], 1152  }
  0x38   : > { %1181 = vsyncadd (%p44_p1), [#allocation9], 4294966144  ;;  %v864_v0 = vld [vmem:[#allocation5 + $0x38] sm:$0xff]  ;;  %v863_v1 = vld [vmem:[#allocation5 + $0x30] sm:$0xff]  ;;  %s854_s26 = sshll.u32 %s1262_s25, 3  ;;  %s755_s7 = sshll.u32 %s1356_s10, 3 }
  0x39   : > { %373 = vmatpush.bf16.msra.mxu0 %v864_v0  ;;  %v872_v2 = vld [vmem:[#allocation7 + $0x38] sm:$0xff]  ;;  %v871_v3 = vld [vmem:[#allocation7 + $0x30] sm:$0xff]  ;;  %v862_v4 = vld [vmem:[#allocation5 + $0x28] sm:$0xff]  ;;  %s627_s27 = scalar_lea.hbm %s1422_s5, %s854_s26  ;;  %s305_s28 = scalar_lea.vmem [#allocation11], %s755_s7 }
  0x3a   : > { %453 = vmatpush.bf16.msra.mxu1 %v872_v2  ;;  %v870_v5 = vld [vmem:[#allocation7 + $0x28] sm:$0xff]  ;;  %v861_v6 = vld [vmem:[#allocation5 + $0x20] sm:$0xff]  ;;  %v860_v8 = vld [vmem:[#allocation5 + $0x18] sm:$0xff]  ;;  %s629_s30 = sshll.u32 %s305_s28, 4  ;;  %s631_s6 = sshll.u32 %s627_s27, 4  ;;  %s630_s30 = int_to_ptr.vmem [resolvable:$true] %s629_s30  ;;  %s632_s6 = int_to_ptr.hbm [resolvable:$true] %s631_s6 }
  0x3b   : > { %v869_v7 = vld [vmem:[#allocation7 + $0x20] sm:$0xff]  ;;  %v868_v9 = vld [vmem:[#allocation7 + $0x18] sm:$0xff]  ;;  %v859_v10 = vld [vmem:[#allocation5 + $0x10] sm:$0xff]  ;;  %s617_s14 = scalar_lea.sflag [#allocation4], %s1356_s10  ;;  %s1140_s15 = sshra.s32 %s632_s6, 4  ;;  %s1141_s15 = int_to_ptr.hbm [resolvable:$true] %s1140_s15 }
  0x3c   : > { %v858_v11 = vld [vmem:[#allocation5 + $0x8] sm:$0xff]  ;;  %v857_v12 = vld [vmem:[#allocation5] sm:$0xff]  ;;  %v307_v13 = vld [vmem:[%s1360_s13] sm:$0xf]  ;;  %s1142_s25 = scalar_lea.hbm %s1141_s15, 8  ;;  %s1146_s17 = scalar_lea.hbm %s1422_s5, 16 }
  0x3d   : > { %374 = vmatpush.bf16.msra.mxu0 %v863_v1  ;;  %v867_v14 = vld [vmem:[#allocation7 + $0x10] sm:$0xff]  ;;  %v866_v15 = vld [vmem:[#allocation7 + $0x8] sm:$0xff]  ;;  %v865_v16 = vld [vmem:[#allocation7] sm:$0xff]  ;;  %p1143_p1 = scmp.ne.s32.totalorder %s1141_s15, %s1142_s25  ;;  %p1147_p12 = scmp.lt.s32.totalorder %s1141_s15, %s1422_s5 }
  0x3e   : > { %454 = vmatpush.bf16.msra.mxu1 %v871_v3  ;;  %v1375_v17 = vld [vmem:[#allocation10] sm:$0xff]  ;;  %v880_v3 = vld [vmem:[#allocation8 + $0x38] sm:$0xff]  ;;  %p1148_p7 = scmp.lt.s32.totalorder %s1146_s17, %s1142_s25 }
  0x3f   : > { %v324_v18 = vperm.slane %v1375_v17, 0  ;;  %v404_v24 = vperm.slane %v1375_v17, 1  ;;  %602 = vmatpush.bf16.msra.mxu2 %v880_v3  ;;  %p1144_p3 = pnand %p1143_p1, %p1325_p4 }
  0x40   : > { %p1149_p8 = por %p1148_p7, %p1147_p12 }
  0x41   : > { %375 = vmatpush.bf16.msra.mxu0 %v862_v4  ;;  %p1145_p5 = pneg %p1144_p3 }
  0x42   : > { %455 = vmatpush.bf16.msra.mxu1 %v870_v5 }
  0x43   : > { %p1150_p9 = pnand %p1149_p8, %p1145_p5 }
  0x45   : > { %376 = vmatpush.bf16.msra.mxu0 %v861_v6  ;;  %v514_v6 = vperm.slane %v1375_v17, 5 }
  0x46   : > { %456 = vmatpush.bf16.msra.mxu1 %v869_v7 }
  0x49   : > { %377 = vmatpush.bf16.msra.mxu0 %v860_v8 }
  0x4a   : > { %457 = vmatpush.bf16.msra.mxu1 %v868_v9 }
  0x4d   : > { %378 = vmatpush.bf16.msra.mxu0 %v859_v10  ;;  %v879_v10 = vld [vmem:[#allocation8 + $0x30] sm:$0xff] }
  0x4e   : > { %458 = vmatpush.bf16.msra.mxu1 %v867_v14  ;;  %603 = vmatpush.bf16.msra.mxu2 %v879_v10  ;;  %v875_v14 = vld [vmem:[#allocation8 + $0x10] sm:$0xff] }
  0x51   : > { %379 = vmatpush.bf16.msra.mxu0 %v858_v11  ;;  %v878_v11 = vld [vmem:[#allocation8 + $0x28] sm:$0xff] }
  0x52   : > { %459 = vmatpush.bf16.msra.mxu1 %v866_v15  ;;  %604 = vmatpush.bf16.msra.mxu2 %v878_v11  ;;  %v874_v15 = vld [vmem:[#allocation8 + $0x8] sm:$0xff] }
  0x55   : > { %380 = vmatpush.bf16.msra.mxu0 %v857_v12  ;;  %v877_v12 = vld [vmem:[#allocation8 + $0x20] sm:$0xff] }
  0x56   : > { %460 = vmatpush.bf16.msra.mxu1 %v865_v16  ;;  %605 = vmatpush.bf16.msra.mxu2 %v877_v12  ;;  %v873_v16 = vld [vmem:[#allocation8] sm:$0xff] }
  0x58   : > { %381 = vmatmul.bf16.vlgmr.msra.gmra.mxu0 %v307_v13  ;;  %v876_v13 = vld [vmem:[#allocation8 + $0x18] sm:$0xff] }
  0x5a   : > { %606 = vmatpush.bf16.msra.mxu2 %v876_v13 }
  0x5e   : > { %607 = vmatpush.bf16.msra.mxu2 %v875_v14 }
  0x62   : > { %608 = vmatpush.bf16.msra.mxu2 %v874_v15 }
  0x66   : > { %609 = vmatpush.bf16.msra.mxu2 %v873_v16 }
  0xd5   : > { %v382_v19 = vpop.f32.mrf.mxu0 }
  0xd6   : > { %v383_v20 = vadd.f32 %v382_v19, %v324_v18 }
  0xd8   : > { %970 = vtanh.f32 %v383_v20 }
  0xdd   : > { %v384_v21 = vpop.f32.mrf.mxu0 }
  0xde   : > { %v971_v22 = vpop.eup %970 }
  0xdf   : > { %v387_v23 = vpack.c.bf16 %v971_v22, %v971_v22 }
  0xe1   : > { %461 = vmatmul.bf16.vlgmr.msra.gmra.mxu1 %v387_v23 }
 0x15e   : > { %v462_v25 = vpop.f32.mrf.mxu1 }
 0x15f   : > { %v463_v26 = vadd.f32 %v462_v25, %v404_v24 }
 0x161   : > { %v467_v27 = vmul.f32 0.70710677, %v463_v26  ;;  %v466_v0 = vmul.f32 0.5, %v463_v26 }
 0x163   : > { %v468_v28 = vmul.f32 %v467_v27, %v467_v27 }
 0x165   : > { %v469_v29 = vmin.f32 %v468_v28, 16.0 }
 0x166   : > { %v464_v30 = vpop.f32.mrf.mxu1 }
 0x167   : > { %v470_v31 = vmul.f32 2.1237322e-06, %v469_v29  ;;  %v481_v32 = vmul.f32 3.8918573e-05, %v469_v29  ;;  %v534_v30 = vperm.slane %v1375_v17, 3 }
 0x169   : > { %v471_v33 = vadd.f32 0.00028619796, %v470_v31  ;;  %v482_v34 = vadd.f32 0.001143296, %v481_v32 }
 0x16b   : > { %v472_v35 = vmul.f32 %v471_v33, %v469_v29  ;;  %v483_v36 = vmul.f32 %v482_v34, %v469_v29  ;;  %v553_v34 = vperm.slane %v1375_v17, 4 }
 0x16d   : > { %v484_v37 = vadd.f32 0.014752088, %v483_v36  ;;  %v473_v38 = vadd.f32 0.0036580483, %v472_v35 }
 0x16f   : > { %v485_v39 = vmul.f32 %v484_v37, %v469_v29  ;;  %v474_v41 = vmul.f32 %v473_v38, %v469_v29 }
 0x171   : > { %v486_v40 = vadd.f32 0.112945676, %v485_v39  ;;  %v475_v44 = vadd.f32 0.05243302, %v474_v41 }
 0x173   : > { %v487_v42 = vmul.f32 %v486_v40, %v469_v29  ;;  %v476_v47 = vmul.f32 %v475_v44, %v469_v29 }
 0x175   : > { %v488_v43 = vadd.f32 0.4994258, %v487_v42  ;;  %v477_v48 = vadd.f32 0.18741608, %v476_v47 }
 0x177   : > { %v489_v45 = vmul.f32 %v488_v43, %v469_v29  ;;  %v478_v50 = vmul.f32 %v477_v48, %v469_v29 }
 0x179   : > { %v490_v46 = vadd.f32 1.0, %v489_v45  ;;  %v479_v54 = vadd.f32 1.1283791, %v478_v50 }
 0x17b   : > { %972 = vrcp.f32 %v490_v46  ;;  %v502_v53 = vand.u32 2147483648, %v490_v46  ;;  %v500_v56 = vand.u32 2147483647, %v490_v46  ;;  %vm496_vm1 = vweird.f32 %v490_v46 }
 0x17c   : > { %v480_v59 = vmul.f32 %v479_v54, %v467_v27  ;;  %v532_v27 = vperm.slane %v1375_v17, 2 }
 0x17d   : > { %v503_v58 = vor.u32 1.1754944e-38, %v502_v53  ;;  %vm501_vm3 = vcmp.eq.f32.partialorder %v500_v56, 8.507059e+37 }
 0x181   : > { %v973_v49 = vpop.eup %972 }
 0x182   : > { %v492_v51 = vmul.f32 %v973_v49, %v490_v46  ;;  %vm497_vm0 = vweird.f32 %v973_v49 }
 0x183   : > { %vm498_vm2 = vmor %vm496_vm1, %vm497_vm0 }
 0x184   : > { %v493_v52 = vsub.f32 1.0, %v492_v51 }
 0x186   : > { %v494_v55 = vmul.f32 %v973_v49, %v493_v52 }
 0x188   : > { %v495_v57 = vadd.f32 %v973_v49, %v494_v55 }
 0x18a   : > { %v499_v60 = vsel %vm498_vm2, %v973_v49, %v495_v57 }
 0x18b   : > { %v504_v61 = vsel %vm501_vm3, %v503_v58, %v499_v60 }
 0x18c   : > { %v505_v62 = vmul.f32 %v504_v61, %v480_v59 }
 0x18e   : > { %v820_v63 = vclamps-f32 %v505_v62, 1.0 }
 0x190   : > { %v508_v1 = vadd.f32 1.0, %v820_v63 }
 0x192   : > { %v509_v2 = vmul.f32 %v508_v1, %v466_v0 }
 0x194   : > { %510 = vadd.xlane.f32.xlu0 %v509_v2 }
 0x207   : > { %v511_v4 = vpop.xlane.xlu0 %510 }
 0x208   : > { %v512_v5 = vmul.f32 0.015625, %v511_v4 }
 0x20a   : > { %v513_v7 = vsub.f32 %v509_v2, %v512_v5 }
 0x20c   : > { %v515_v8 = vmul.f32 %v514_v6, %v513_v7 }
 0x20e   : > { %v516_v9 = vmul.f32 %v515_v8, %v515_v8 }
 0x210   : > { %517 = vadd.xlane.f32.xlu0 %v516_v9 }
 0x283   : > { %v518_v18 = vpop.xlane.xlu0 %517 }
 0x284   : > { %v519_v19 = vmul.f32 0.015625, %v518_v18 }
 0x286   : > { %v520_v20 = vadd.f32 1e-12, %v519_v19 }
 0x288   : > { %974 = vrsqrt.f32 %v520_v20  ;;  %vm527_vm5 = vweird.f32 %v520_v20 }
 0x28e   : > { %v975_v21 = vpop.eup %974 }
 0x28f   : > { %v522_v22 = vmul.f32 %v975_v21, %v520_v20  ;;  %vm528_vm4 = vweird.f32 %v975_v21 }
 0x290   : > { %vm529_vm6 = vmor %vm527_vm5, %vm528_vm4 }
 0x291   : > { %v523_v23 = vmul.f32 %v975_v21, %v522_v22 }
 0x293   : > { %v524_v24 = vmul.f32 0.5, %v523_v23 }
 0x295   : > { %v525_v25 = vsub.f32 1.5, %v524_v24 }
 0x297   : > { %v526_v26 = vmul.f32 %v975_v21, %v525_v25 }
 0x299   : > { %v530_v28 = vsel %vm529_vm6, %v975_v21, %v526_v26 }
 0x29a   : > { %v531_v29 = vmul.f32 %v530_v28, %v515_v8 }
 0x29c   : > { %v533_v31 = vmul.f32 %v532_v27, %v531_v29 }
 0x29e   : > { %v535_v32 = vadd.f32 %v534_v30, %v533_v31 }
 0x2a0   : > { %v536_v33 = vpack.c.bf16 %v535_v32, %v535_v32 }
 0x2a2   : > { %610 = vmatmul.bf16.vlgmr.msra.gmra.mxu2 %v536_v33 }
 0x325   : > { %v611_v35 = vpop.f32.mrf.mxu2 }
 0x326   : > { %v612_v36 = vadd.f32 %v611_v35, %v553_v34 }
 0x328   : > { %615 = vst [vmem:[%s305_s28] sm:$0xff] %v612_v36 }
 0x329   : > { %1153 = shalt.err (!%p1150_p9)
}
 0x32a   : > { %899 = dma.vmem_to_hbm [thread:$0]  (%p1325_p4), %s630_s30, 128, %s632_s6, %s617_s14  }
 0x32d   : > { %v613_v17 = vpop.f32.mrf.mxu2 }
 0x32e PF: > { %s643_s10 = sand.u32 1, %s1188_s18   ;;  %p1430_p10 = scmp.ge.s32.totalorder %s1200_s21, 2 }
 0x32f   : > { %s644_s26 = scalar_lea.sflag [#allocation4], %s643_s10 }
 0x330   : > { %p919_p13 = pnand %p1430_p10, %p1329_p6 }
 0x332   : > { %p920_p11 = pneg %p919_p13 }
 0x334   : > { %1183 = dma.done.wait (%p920_p11), %s644_s26, 128  }
 0x335   : > { %1185 = vsyncadd (%p920_p11), %s644_s26, 4294967168  ;;  %p20_p0 = scmp.ge.s32.totalorder %s1299_s29, 4   ;;  %s1431_s18 = smov %s1192_s19 }
 0x336   : > { %s1432_s19 = smov %s1196_s20  ;;  %s1433_s20 = smov %s1310_s8 }
 0x337   : > { %s1434_s21 = smov %s1299_s29  ;;  %22 = sbr.rel (!%p20_p0) target bundleno = 7 (0x7), region = 101 }
 0x33c   :  { %650 = vsyncpa [#allocation3], 1 }
 0x33d   :  { %652 = vsyncpa [#allocation3 + $0x1], 1 }
 0x33e   :  { %653 = vsyncpa [#allocation6], 1 }
 0x33f   :  { %654 = vsyncpa [#allocation9], 1 }
 0x340   :  { %655 = vsyncpa [#allocation4], 1 }
 0x341   :  { %657 = vsyncpa [#allocation4 + $0x1], 1 }

// kernel: tpu_custom_call.1
= control target key start
LH: loop header
LB: loop body
LE: loop exit
PB: predicated region body
PF: predicated region fallthrough
CT: control target
= control target key end

     0   :  { %10 = vsyncpa [#allocation3], 0  ;;  %s1417_s0 = inlined_call_operand.hbm [shape: bf16[16,128], index: 0, kind: input, shape index: {}]   ;;  %s1418_s1 = inlined_call_operand.hbm [shape: bf16[128,128], index: 1, kind: input, shape index: {}]   ;;  %s1419_s2 = inlined_call_operand.hbm [shape: bf16[128,128], index: 2, kind: input, shape index: {}]   ;;  %s1420_s3 = inlined_call_operand.hbm [shape: bf16[128,128], index: 3, kind: input, shape index: {}]   ;;  %s1421_s4 = inlined_call_operand.hbm [shape: f32[8,128], index: 4, kind: input, shape index: {}]   ;;  %s1422_s5 = inlined_call_operand.hbm [shape: f32[16,128], index: 5, kind: output, shape index: {}]  }
   0x1   :  { %12 = vsyncpa [#allocation3 + $0x1], 0 }
   0x2   :  { %13 = vsyncpa [#allocation6], 0 }
   0x3   :  { %14 = vsyncpa [#allocation9], 0 }
   0x4   :  { %15 = vsyncpa [#allocation4], 0 }
   0x5   :  { %17 = vsyncpa [#allocation4 + $0x1], 0  ;;  %s1238_s18 = smov 0   ;;  %s1240_s19 = smov 0  }
   0x6   :  { %s1242_s20 = smov 0   ;;  %s1244_s21 = smov 0  }
   0x7 LB: > { %s175_s24 = sshll.u32 %s1418_s1, 4  ;;  %s1262_s25 = sadd.s32 4294967295, %s1200_s21   ;;  %s1200_s21 = sphi %s1244_s21, %s1434_s21   ;;  %s1196_s20 = sphi %s1242_s20, %s1433_s20   ;;  %s1192_s19 = sphi %s1240_s19, %s1432_s19   ;;  %s1188_s18 = sphi %s1238_s18, %s1431_s18   ;;  %s176_s24 = int_to_ptr.hbm [resolvable:$true] %s175_s24 }
   0x8   : > { %p741_p0 = scmp.ge.s32.totalorder %s1200_s21, 1  ;;  %p44_p1 = scmp.eq.s32.totalorder %s1262_s25, 0 }
   0x9   : > { %p164_p2 = scmp.lt.s32.totalorder %s1200_s21, 3  ;;  %s1202_s27 = smov [#allocation5]  }
   0xa   : > { %s177_s28 = sshll.u32 %s1202_s27, 4  ;;  %s203_s6 = sshll.u32 %s1420_s3, 4  ;;  %s178_s28 = int_to_ptr.vmem [resolvable:$true] %s177_s28  ;;  %s204_s6 = int_to_ptr.hbm [resolvable:$true] %s203_s6 }
   0xb   : > { %p1267_p3 = pnand %p741_p0, %p164_p2  ;;  %s189_s10 = sshll.u32 %s1419_s2, 4  ;;  %s190_s10 = int_to_ptr.hbm [resolvable:$true] %s189_s10 }
   0xc   : > { %s1203_s11 = smov [#allocation8]   ;;  %s1204_s13 = smov 64  }
   0xd   : > { %p901_p4 = pneg %p1267_p3  ;;  %s205_s12 = sshll.u32 %s1203_s11, 4  ;;  %s206_s12 = int_to_ptr.vmem [resolvable:$true] %s205_s12 }
   0xe   : > { %s1205_s14 = smov 4   ;;  %s218_s17 = sshll.u32 %s1421_s4, 4  ;;  %s219_s17 = int_to_ptr.hbm [resolvable:$true] %s218_s17 }
   0xf   : > { %p1279_p6 = pnand %p901_p4, %p44_p1  ;;  %s1206_s22 = smov [#allocation7]  }
  0x10   : > { %s191_s23 = sshll.u32 %s1206_s22, 4  ;;  %s1299_s29 = sadd.s32 1, %s1200_s21   ;;  %s192_s23 = int_to_ptr.vmem [resolvable:$true] %s191_s23 }
  0x11   : > { %904 = dma.hbm_to_vmem [thread:$0]  (!%p1279_p6), %s176_s24, 1024, %s178_s28, [#allocation6], %s1204_s13, %s1204_s13, %s1205_s14  }
  0x12   : > { %910 = dma.hbm_to_vmem [thread:$0]  (!%p1279_p6), %s204_s6, 1024, %s206_s12, [#allocation9], %s1204_s13, %s1204_s13, %s1205_s14  }
  0x13   : > { %907 = dma.hbm_to_vmem [thread:$0]  (!%p1279_p6), %s190_s10, 1024, %s192_s23, [#allocation6], %s1204_s13, %s1204_s13, %s1205_s14  }
  0x14   : > { %s1207_s24 = smov [#allocation10]   ;;  %s740_s28 = sadd.s32 4294967294, %s1200_s21  }
  0x15   : > { %s220_s27 = sshll.u32 %s1207_s24, 4  ;;  %s27_s30 = ssub.s32 %s1200_s21, %s1299_s29  ;;  %s221_s27 = int_to_ptr.vmem [resolvable:$true] %s220_s27 }
  0x16   : > { %913 = dma.hbm_to_vmem [thread:$0]  (!%p1279_p6), %s219_s17, 128, %s221_s27, [#allocation9]  }
  0x17   : > { %s30_s6 = sadd.s32 1, %s1196_s20  ;;  %p28_p7 = scmp.eq.s32.totalorder %s27_s30, 0 }
  0x18   : > { %p37_p8 = scmp.ne.s32.totalorder %s1196_s20, %s1192_s19  ;;  %p38_p9 = scmp.eq.s32.totalorder %s1200_s21, 0 }
  0x19   : > { %p43_p10 = scmp.ne.s32.totalorder %s1192_s19, %s1188_s18  ;;  %p151_p13 = scmp.eq.s32.totalorder %s1262_s25, 1 }
  0x1a   : > { %s1310_s8 = scalar_select %p28_p7, %s1196_s20, %s30_s6  }
  0x1b   : > { %p1312_p11 = por %p38_p9, %p37_p8  ;;  %p1318_p12 = por %p44_p1, %p43_p10 }
  0x1c   : > { %p157_p0 = scmp.eq.s32.totalorder %s740_s28, 1  ;;  %p926_p2 = scmp.lt.s32.totalorder %s1200_s21, 2 }
  0x1d   : > { %s231_s10 = sand.u32 1, %s1196_s20   ;;  %p1325_p4 = por %p151_p13, %p37_p8 }
  0x1e   : > { %p1329_p6 = por %p157_p0, %p43_p10  ;;  %s747_s13 = sshll.u32 %s231_s10, 2 }
  0x1f   : > { %s748_s14 = sshll.u32 %s1200_s21, 2  ;;  %s235_s22 = scalar_lea.vmem [#allocation2], %s747_s13 }
  0x20   : > { %s239_s17 = scalar_lea.hbm %s1417_s0, %s748_s14  ;;  %s243_s23 = sshll.u32 %s235_s22, 4  ;;  %s244_s23 = int_to_ptr.vmem [resolvable:$true] %s243_s23 }
  0x21   : > { %s241_s24 = sshll.u32 %s239_s17, 4  ;;  %p1339_p7 = pnand %p926_p2, %p1312_p11  ;;  %s242_s24 = int_to_ptr.hbm [resolvable:$true] %s241_s24 }
  0x22   : > { %s232_s28 = scalar_lea.sflag [#allocation3], %s231_s10  ;;  %s1096_s30 = sshra.s32 %s242_s24, 4  ;;  %s1097_s30 = int_to_ptr.hbm [resolvable:$true] %s1096_s30 }
  0x23   : > { %s1098_s6 = scalar_lea.hbm %s1097_s30, 4  ;;  %p1100_p9 = pneg %p1339_p7 }
  0x24   : > { %p1099_p8 = scmp.ne.s32.totalorder %s1097_s30, %s1098_s6  ;;  %s1103_s15 = scalar_lea.hbm %s1417_s0, 8 }
  0x25   : > { %p1104_p11 = scmp.lt.s32.totalorder %s1097_s30, %s1417_s0  ;;  %p1105_p0 = scmp.lt.s32.totalorder %s1103_s15, %s1098_s6 }
  0x26   : > { %p1101_p10 = pnand %p1100_p9, %p1099_p8 }
  0x27   : > { %p1106_p2 = por %p1105_p0, %p1104_p11 }
  0x28   : > { %p1102_p13 = pneg %p1101_p10 }
  0x2a   : > { %p1107_p5 = pnand %p1106_p2, %p1102_p13 }
  0x2c   : > { %1110 = shalt.err (!%p1107_p5)
}
  0x2d   : > { %917 = dma.hbm_to_vmem [thread:$0]  (!%p1339_p7), %s242_s24, 64, %s244_s23, %s232_s28  }
  0x2e   : > { %252 = sbr.rel (%p1267_p3) target bundleno = 814 (0x32e), region = 40  ;;  %s1356_s10 = sand.u32 (!%p1267_p3), 1, %s1192_s19  }
  0x2f   : > { %s750_s17 = sshll.u32 (!%p1267_p3), %s1356_s10, 2  ;;  %s255_s22 = scalar_lea.sflag (!%p1267_p3), [#allocation3], %s1356_s10 }
  0x30   : > { %s1360_s13 = scalar_lea.vmem (!%p1267_p3), [#allocation2], %s750_s17 }
  0x33   : > { %1171 = dma.done.wait (%p1318_p12), %s255_s22, 64  }
  0x34   : > { %1173 = vsyncadd (%p1318_p12), %s255_s22, 4294967232 }
  0x35   : > { %1175 = dma.done.wait (%p44_p1), [#allocation6], 2048  }
  0x36   : > { %1177 = vsyncadd (%p44_p1), [#allocation6], 4294965248 }
  0x37   : > { %1179 = dma.done.wait (%p44_p1), [#allocation9], 1152  }
  0x38   : > { %1181 = vsyncadd (%p44_p1), [#allocation9], 4294966144  ;;  %v864_v0 = vld [vmem:[#allocation5 + $0x38] sm:$0xff]  ;;  %v863_v1 = vld [vmem:[#allocation5 + $0x30] sm:$0xff]  ;;  %s854_s26 = sshll.u32 %s1262_s25, 3  ;;  %s755_s7 = sshll.u32 %s1356_s10, 3 }
  0x39   : > { %373 = vmatpush.bf16.msra.mxu0 %v864_v0  ;;  %v872_v2 = vld [vmem:[#allocation7 + $0x38] sm:$0xff]  ;;  %v871_v3 = vld [vmem:[#allocation7 + $0x30] sm:$0xff]  ;;  %v862_v4 = vld [vmem:[#allocation5 + $0x28] sm:$0xff]  ;;  %s627_s27 = scalar_lea.hbm %s1422_s5, %s854_s26  ;;  %s305_s28 = scalar_lea.vmem [#allocation11], %s755_s7 }
  0x3a   : > { %453 = vmatpush.bf16.msra.mxu1 %v872_v2  ;;  %v870_v5 = vld [vmem:[#allocation7 + $0x28] sm:$0xff]  ;;  %v861_v6 = vld [vmem:[#allocation5 + $0x20] sm:$0xff]  ;;  %v860_v8 = vld [vmem:[#allocation5 + $0x18] sm:$0xff]  ;;  %s629_s30 = sshll.u32 %s305_s28, 4  ;;  %s631_s6 = sshll.u32 %s627_s27, 4  ;;  %s630_s30 = int_to_ptr.vmem [resolvable:$true] %s629_s30  ;;  %s632_s6 = int_to_ptr.hbm [resolvable:$true] %s631_s6 }
  0x3b   : > { %v869_v7 = vld [vmem:[#allocation7 + $0x20] sm:$0xff]  ;;  %v868_v9 = vld [vmem:[#allocation7 + $0x18] sm:$0xff]  ;;  %v859_v10 = vld [vmem:[#allocation5 + $0x10] sm:$0xff]  ;;  %s617_s14 = scalar_lea.sflag [#allocation4], %s1356_s10  ;;  %s1140_s15 = sshra.s32 %s632_s6, 4  ;;  %s1141_s15 = int_to_ptr.hbm [resolvable:$true] %s1140_s15 }
  0x3c   : > { %v858_v11 = vld [vmem:[#allocation5 + $0x8] sm:$0xff]  ;;  %v857_v12 = vld [vmem:[#allocation5] sm:$0xff]  ;;  %v307_v13 = vld [vmem:[%s1360_s13] sm:$0xf]  ;;  %s1142_s25 = scalar_lea.hbm %s1141_s15, 8  ;;  %s1146_s17 = scalar_lea.hbm %s1422_s5, 16 }
  0x3d   : > { %374 = vmatpush.bf16.msra.mxu0 %v863_v1  ;;  %v867_v14 = vld [vmem:[#allocation7 + $0x10] sm:$0xff]  ;;  %v866_v15 = vld [vmem:[#allocation7 + $0x8] sm:$0xff]  ;;  %v865_v16 = vld [vmem:[#allocation7] sm:$0xff]  ;;  %p1143_p1 = scmp.ne.s32.totalorder %s1141_s15, %s1142_s25  ;;  %p1147_p12 = scmp.lt.s32.totalorder %s1141_s15, %s1422_s5 }
  0x3e   : > { %454 = vmatpush.bf16.msra.mxu1 %v871_v3  ;;  %v1375_v17 = vld [vmem:[#allocation10] sm:$0xff]  ;;  %v880_v3 = vld [vmem:[#allocation8 + $0x38] sm:$0xff]  ;;  %p1148_p7 = scmp.lt.s32.totalorder %s1146_s17, %s1142_s25 }
  0x3f   : > { %v324_v18 = vperm.slane %v1375_v17, 0  ;;  %v404_v24 = vperm.slane %v1375_v17, 1  ;;  %602 = vmatpush.bf16.msra.mxu2 %v880_v3  ;;  %p1144_p3 = pnand %p1143_p1, %p1325_p4 }
  0x40   : > { %p1149_p8 = por %p1148_p7, %p1147_p12 }
  0x41   : > { %375 = vmatpush.bf16.msra.mxu0 %v862_v4  ;;  %p1145_p5 = pneg %p1144_p3 }
  0x42   : > { %455 = vmatpush.bf16.msra.mxu1 %v870_v5 }
  0x43   : > { %p1150_p9 = pnand %p1149_p8, %p1145_p5 }
  0x45   : > { %376 = vmatpush.bf16.msra.mxu0 %v861_v6  ;;  %v514_v6 = vperm.slane %v1375_v17, 5 }
  0x46   : > { %456 = vmatpush.bf16.msra.mxu1 %v869_v7 }
  0x49   : > { %377 = vmatpush.bf16.msra.mxu0 %v860_v8 }
  0x4a   : > { %457 = vmatpush.bf16.msra.mxu1 %v868_v9 }
  0x4d   : > { %378 = vmatpush.bf16.msra.mxu0 %v859_v10  ;;  %v879_v10 = vld [vmem:[#allocation8 + $0x30] sm:$0xff] }
  0x4e   : > { %458 = vmatpush.bf16.msra.mxu1 %v867_v14  ;;  %603 = vmatpush.bf16.msra.mxu2 %v879_v10  ;;  %v875_v14 = vld [vmem:[#allocation8 + $0x10] sm:$0xff] }
  0x51   : > { %379 = vmatpush.bf16.msra.mxu0 %v858_v11  ;;  %v878_v11 = vld [vmem:[#allocation8 + $0x28] sm:$0xff] }
  0x52   : > { %459 = vmatpush.bf16.msra.mxu1 %v866_v15  ;;  %604 = vmatpush.bf16.msra.mxu2 %v878_v11  ;;  %v874_v15 = vld [vmem:[#allocation8 + $0x8] sm:$0xff] }
  0x55   : > { %380 = vmatpush.bf16.msra.mxu0 %v857_v12  ;;  %v877_v12 = vld [vmem:[#allocation8 + $0x20] sm:$0xff] }
  0x56   : > { %460 = vmatpush.bf16.msra.mxu1 %v865_v16  ;;  %605 = vmatpush.bf16.msra.mxu2 %v877_v12  ;;  %v873_v16 = vld [vmem:[#allocation8] sm:$0xff] }
  0x58   : > { %381 = vmatmul.bf16.vlgmr.msra.gmra.mxu0 %v307_v13  ;;  %v876_v13 = vld [vmem:[#allocation8 + $0x18] sm:$0xff] }
  0x5a   : > { %606 = vmatpush.bf16.msra.mxu2 %v876_v13 }
  0x5e   : > { %607 = vmatpush.bf16.msra.mxu2 %v875_v14 }
  0x62   : > { %608 = vmatpush.bf16.msra.mxu2 %v874_v15 }
  0x66   : > { %609 = vmatpush.bf16.msra.mxu2 %v873_v16 }
  0xd5   : > { %v382_v19 = vpop.f32.mrf.mxu0 }
  0xd6   : > { %v383_v20 = vadd.f32 %v382_v19, %v324_v18 }
  0xd8   : > { %970 = vtanh.f32 %v383_v20 }
  0xdd   : > { %v384_v21 = vpop.f32.mrf.mxu0 }
  0xde   : > { %v971_v22 = vpop.eup %970 }
  0xdf   : > { %v387_v23 = vpack.c.bf16 %v971_v22, %v971_v22 }
  0xe1   : > { %461 = vmatmul.bf16.vlgmr.msra.gmra.mxu1 %v387_v23 }
 0x15e   : > { %v462_v25 = vpop.f32.mrf.mxu1 }
 0x15f   : > { %v463_v26 = vadd.f32 %v462_v25, %v404_v24 }
 0x161   : > { %v467_v27 = vmul.f32 0.70710677, %v463_v26  ;;  %v466_v0 = vmul.f32 0.5, %v463_v26 }
 0x163   : > { %v468_v28 = vmul.f32 %v467_v27, %v467_v27 }
 0x165   : > { %v469_v29 = vmin.f32 %v468_v28, 16.0 }
 0x166   : > { %v464_v30 = vpop.f32.mrf.mxu1 }
 0x167   : > { %v470_v31 = vmul.f32 2.1237322e-06, %v469_v29  ;;  %v481_v32 = vmul.f32 3.8918573e-05, %v469_v29  ;;  %v534_v30 = vperm.slane %v1375_v17, 3 }
 0x169   : > { %v471_v33 = vadd.f32 0.00028619796, %v470_v31  ;;  %v482_v34 = vadd.f32 0.001143296, %v481_v32 }
 0x16b   : > { %v472_v35 = vmul.f32 %v471_v33, %v469_v29  ;;  %v483_v36 = vmul.f32 %v482_v34, %v469_v29  ;;  %v553_v34 = vperm.slane %v1375_v17, 4 }
 0x16d   : > { %v484_v37 = vadd.f32 0.014752088, %v483_v36  ;;  %v473_v38 = vadd.f32 0.0036580483, %v472_v35 }
 0x16f   : > { %v485_v39 = vmul.f32 %v484_v37, %v469_v29  ;;  %v474_v41 = vmul.f32 %v473_v38, %v469_v29 }
 0x171   : > { %v486_v40 = vadd.f32 0.112945676, %v485_v39  ;;  %v475_v44 = vadd.f32 0.05243302, %v474_v41 }
 0x173   : > { %v487_v42 = vmul.f32 %v486_v40, %v469_v29  ;;  %v476_v47 = vmul.f32 %v475_v44, %v469_v29 }
 0x175   : > { %v488_v43 = vadd.f32 0.4994258, %v487_v42  ;;  %v477_v48 = vadd.f32 0.18741608, %v476_v47 }
 0x177   : > { %v489_v45 = vmul.f32 %v488_v43, %v469_v29  ;;  %v478_v50 = vmul.f32 %v477_v48, %v469_v29 }
 0x179   : > { %v490_v46 = vadd.f32 1.0, %v489_v45  ;;  %v479_v54 = vadd.f32 1.1283791, %v478_v50 }
 0x17b   : > { %972 = vrcp.f32 %v490_v46  ;;  %v502_v53 = vand.u32 2147483648, %v490_v46  ;;  %v500_v56 = vand.u32 2147483647, %v490_v46  ;;  %vm496_vm1 = vweird.f32 %v490_v46 }
 0x17c   : > { %v480_v59 = vmul.f32 %v479_v54, %v467_v27  ;;  %v532_v27 = vperm.slane %v1375_v17, 2 }
 0x17d   : > { %v503_v58 = vor.u32 1.1754944e-38, %v502_v53  ;;  %vm501_vm3 = vcmp.eq.f32.partialorder %v500_v56, 8.507059e+37 }
 0x181   : > { %v973_v49 = vpop.eup %972 }
 0x182   : > { %v492_v51 = vmul.f32 %v973_v49, %v490_v46  ;;  %vm497_vm0 = vweird.f32 %v973_v49 }
 0x183   : > { %vm498_vm2 = vmor %vm496_vm1, %vm497_vm0 }
 0x184   : > { %v493_v52 = vsub.f32 1.0, %v492_v51 }
 0x186   : > { %v494_v55 = vmul.f32 %v973_v49, %v493_v52 }
 0x188   : > { %v495_v57 = vadd.f32 %v973_v49, %v494_v55 }
 0x18a   : > { %v499_v60 = vsel %vm498_vm2, %v973_v49, %v495_v57 }
 0x18b   : > { %v504_v61 = vsel %vm501_vm3, %v503_v58, %v499_v60 }
 0x18c   : > { %v505_v62 = vmul.f32 %v504_v61, %v480_v59 }
 0x18e   : > { %v820_v63 = vclamps-f32 %v505_v62, 1.0 }
 0x190   : > { %v508_v1 = vadd.f32 1.0, %v820_v63 }
 0x192   : > { %v509_v2 = vmul.f32 %v508_v1, %v466_v0 }
 0x194   : > { %510 = vadd.xlane.f32.xlu0 %v509_v2 }
 0x207   : > { %v511_v4 = vpop.xlane.xlu0 %510 }
 0x208   : > { %v512_v5 = vmul.f32 0.015625, %v511_v4 }
 0x20a   : > { %v513_v7 = vsub.f32 %v509_v2, %v512_v5 }
 0x20c   : > { %v515_v8 = vmul.f32 %v514_v6, %v513_v7 }
 0x20e   : > { %v516_v9 = vmul.f32 %v515_v8, %v515_v8 }
 0x210   : > { %517 = vadd.xlane.f32.xlu0 %v516_v9 }
 0x283   : > { %v518_v18 = vpop.xlane.xlu0 %517 }
 0x284   : > { %v519_v19 = vmul.f32 0.015625, %v518_v18 }
 0x286   : > { %v520_v20 = vadd.f32 1e-12, %v519_v19 }
 0x288   : > { %974 = vrsqrt.f32 %v520_v20  ;;  %vm527_vm5 = vweird.f32 %v520_v20 }
 0x28e   : > { %v975_v21 = vpop.eup %974 }
 0x28f   : > { %v522_v22 = vmul.f32 %v975_v21, %v520_v20  ;;  %vm528_vm4 = vweird.f32 %v975_v21 }
 0x290   : > { %vm529_vm6 = vmor %vm527_vm5, %vm528_vm4 }
 0x291   : > { %v523_v23 = vmul.f32 %v975_v21, %v522_v22 }
 0x293   : > { %v524_v24 = vmul.f32 0.5, %v523_v23 }
 0x295   : > { %v525_v25 = vsub.f32 1.5, %v524_v24 }
 0x297   : > { %v526_v26 = vmul.f32 %v975_v21, %v525_v25 }
 0x299   : > { %v530_v28 = vsel %vm529_vm6, %v975_v21, %v526_v26 }
 0x29a   : > { %v531_v29 = vmul.f32 %v530_v28, %v515_v8 }
 0x29c   : > { %v533_v31 = vmul.f32 %v532_v27, %v531_v29 }
 0x29e   : > { %v535_v32 = vadd.f32 %v534_v30, %v533_v31 }
 0x2a0   : > { %v536_v33 = vpack.c.bf16 %v535_v32, %v535_v32 }
 0x2a2   : > { %610 = vmatmul.bf16.vlgmr.msra.gmra.mxu2 %v536_v33 }
 0x325   : > { %v611_v35 = vpop.f32.mrf.mxu2 }
 0x326   : > { %v612_v36 = vadd.f32 %v611_v35, %v553_v34 }
 0x328   : > { %615 = vst [vmem:[%s305_s28] sm:$0xff] %v612_v36 }
 0x329   : > { %1153 = shalt.err (!%p1150_p9)
}
 0x32a   : > { %899 = dma.vmem_to_hbm [thread:$0]  (%p1325_p4), %s630_s30, 128, %s632_s6, %s617_s14  }
 0x32d   : > { %v613_v17 = vpop.f32.mrf.mxu2 }
 0x32e PF: > { %s643_s10 = sand.u32 1, %s1188_s18   ;;  %p1430_p10 = scmp.ge.s32.totalorder %s1200_s21, 2 }
 0x32f   : > { %s644_s26 = scalar_lea.sflag [#allocation4], %s643_s10 }
 0x330   : > { %p919_p13 = pnand %p1430_p10, %p1329_p6 }
 0x332   : > { %p920_p11 = pneg %p919_p13 }
 0x334   : > { %1183 = dma.done.wait (%p920_p11), %s644_s26, 128  }
 0x335   : > { %1185 = vsyncadd (%p920_p11), %s644_s26, 4294967168  ;;  %p20_p0 = scmp.ge.s32.totalorder %s1299_s29, 4   ;;  %s1431_s18 = smov %s1192_s19 }
 0x336   : > { %s1432_s19 = smov %s1196_s20  ;;  %s1433_s20 = smov %s1310_s8 }
 0x337   : > { %s1434_s21 = smov %s1299_s29  ;;  %22 = sbr.rel (!%p20_p0) target bundleno = 7 (0x7), region = 101 }
 0x33c   :  { %650 = vsyncpa [#allocation3], 1 }
 0x33d   :  { %652 = vsyncpa [#allocation3 + $0x1], 1 }
 0x33e   :  { %653 = vsyncpa [#allocation6], 1 }
 0x33f   :  { %654 = vsyncpa [#allocation9], 1 }
 0x340   :  { %655 = vsyncpa [#allocation4], 1 }
 0x341   :  { %657 = vsyncpa [#allocation4 + $0x1], 1 }

</bundles_post_ra>
